<compile_context>
chip_gen: v5e
topology: v5e:2x2
jax: 0.10.0
libtpu: 0.0.40
codegen_flags: <defaults>
</compile_context>

<pallas_src>
import functools
from math import ceil

import jax
import jax.numpy as jnp
from jax.experimental import pallas as pl
from jax.experimental.pallas import tpu as pltpu

LANE = 128


def _ru8(v):
    return ((v + 7) // 8) * 8


# --------------------------------------------------------------------------
# Parameter-slab layout (all entries 8-row / sublane aligned, 128 lanes wide)
# --------------------------------------------------------------------------
def _param_layout(input_dim, hidden, k, hc, c1, c2, out_dim):
    entries = [
        ("fc1_w", input_dim, hidden), ("fc1_b", 1, hidden),
        ("cl_w", hidden, k),          ("cl_b", 1, k),
        ("p1_gw", hidden, hc),        ("p1_gb", 1, hc),
        ("p1_cw", hc, c1),            ("p1_cb", 1, c1),
        ("p2_gw", hidden, hc),        ("p2_gb", 1, hc),
        ("p2_cw", hc, c2),            ("p2_cb", 1, c2),
        ("g1_w", hidden, hc),         ("g1_b", 1, hc),
        ("fc_w", hc, out_dim),        ("fc_b", 1, out_dim),
    ]
    layout, row = {}, 0
    for name, r, c in entries:
        layout[name] = (row, r, c)
        row += _ru8(r)
    return layout, row


_PARAM_TO_KEY = {
    "fc1_w": "fc1_w", "fc1_b": "fc1_b",
    "cl_w": "cl_w", "cl_b": "cl_b",
    "p1_gw": "p1_gcn_w", "p1_gb": "p1_gcn_b",
    "p1_cw": "p1_cl_w", "p1_cb": "p1_cl_b",
    "p2_gw": "p2_gcn_w", "p2_gb": "p2_gcn_b",
    "p2_cw": "p2_cl_w", "p2_cb": "p2_cl_b",
    "g1_w": "g1_w", "g1_b": "g1_b",
    "fc_w": "fc_w", "fc_b": "fc_b",
}


def _pack_params(p, layout, total_rows):
    slab = jnp.zeros((total_rows, LANE), jnp.float32)
    for name, (r0, r, c) in layout.items():
        arr = jnp.asarray(p[_PARAM_TO_KEY[name]], jnp.float32).reshape(r, c)
        slab = slab.at[r0:r0 + r, 0:c].set(arr)
    return slab


# --------------------------------------------------------------------------
# Fused kernel: full PGP forward (merge_mode='MEAN', eval mode) for ONE graph.
# --------------------------------------------------------------------------
def _pgp_fused_kernel(data_ref, w_ref, out_ref, *, cfg, layout):
    f32 = jnp.float32
    n, din = cfg["n"], cfg["input_dim"]
    k, hc = cfg["k"], cfg["hc"]
    out_dim = cfg["out_dim"]
    adj_r0 = cfg["adj_row0"]
    orows = cfg["orows"]

    def W(name):
        r0, r, c = layout[name]
        return w_ref[r0:r0 + r, 0:c]            # static slice: zero-cost view

    def softmax_rows(z):
        m = jnp.max(z, axis=-1, keepdims=True)
        e = jnp.exp(z - m)
        return e / jnp.sum(e, axis=-1, keepdims=True)

    def gcn(xv, adjv, w, b):
        # A' = A + I ; deg = rowsum(A') = rowsum(A) + 1 >= 1 (no inf guard)
        deg = jnp.sum(adjv, axis=1, keepdims=True) + 1.0
        dinv = jax.lax.rsqrt(deg)
        # D^-1/2 A' D^-1/2 (X W) == dinv * (A z + z), z = dinv * (X W)
        z = dinv * jnp.dot(xv, w, preferred_element_type=f32)
        out = dinv * (jnp.dot(adjv, z, preferred_element_type=f32) + z) + b
        return jnp.maximum(out, 0.0)

    dn_t = (((0,), (0,)), ((), ()))             # contract dim0 x dim0 => S^T @ M

    def pool(s, xv, adjv):
        # Fuse S^T X and S^T A into one MXU pass on concat([X, A], axis=1).
        hid = xv.shape[1]
        cat = jnp.concatenate([xv, adjv], axis=1)
        res = jax.lax.dot_general(s, cat, dn_t, preferred_element_type=f32)
        x_ass = res[:, 0:hid]
        sta = res[:, hid:]
        adj_ass = jnp.dot(sta, s, preferred_element_type=f32)
        return x_ass, adj_ass

    x = data_ref[0:n, 0:din]
    adj = data_ref[adj_r0:adj_r0 + n, 0:n]

    # ---- PGP encoder: fc1 + relu (Dropout(0.5) is identity in eval mode)
    x_enc = jnp.maximum(
        jnp.dot(x, W("fc1_w"), preferred_element_type=f32) + W("fc1_b"), 0.0)
    ca = softmax_rows(
        jnp.dot(x_enc, W("cl_w"), preferred_element_type=f32) + W("cl_b"))
    x_ass, adj_ass = pool(ca, x_enc, adj)

    # compute_entropy re-applies softmax to the already-softmaxed assignments
    # (kept deliberately for parity with the torch reference).
    pr = softmax_rows(ca)
    ent_rows = -jnp.sum(pr * jnp.log(pr + 1e-10), axis=1, keepdims=True)
    ent = jnp.mean(ent_rows, axis=0, keepdims=True)                   # (1,1)

    # ---- DiffPool.pool1 (its entropy / Frobenius terms are unused upstream)
    x_gnn_1 = gcn(x_ass, adj_ass, W("p1_gw"), W("p1_gb"))
    s_1 = softmax_rows(
        jnp.dot(x_gnn_1, W("p1_cw"), preferred_element_type=f32) + W("p1_cb"))
    x_ass_1, adj_ass_1 = pool(s_1, x_ass, adj_ass)

    # ---- DiffPool.pool2
    x_gnn_2 = gcn(x_ass_1, adj_ass_1, W("p2_gw"), W("p2_gb"))
    s_2 = softmax_rows(
        jnp.dot(x_gnn_2, W("p2_cw"), preferred_element_type=f32) + W("p2_cb"))
    x_ass_2, adj_ass_2 = pool(s_2, x_ass_1, adj_ass_1)

    # ---- DiffPool.gcn1 + per-level mean readout + MEAN merge + fc
    x_gnn_3 = gcn(x_ass_2, adj_ass_2, W("g1_w"), W("g1_b"))
    x_1 = jnp.mean(x_gnn_1, axis=0, keepdims=True)                    # (1, hc)
    x_2 = jnp.mean(x_gnn_2, axis=0, keepdims=True)
    x_3 = jnp.mean(x_gnn_3, axis=0, keepdims=True)
    x_att = (x_1 + x_2 + x_3) * (1.0 / 3.0)
    x_diff = jnp.dot(x_att, W("fc_w"), preferred_element_type=f32) + W("fc_b")

    # ---- pack every result into ONE lane-dense slab -> single unmasked store
    def padcols(a):
        padw = LANE - a.shape[1]
        if padw == 0:
            return a
        return jnp.concatenate([a, jnp.zeros((a.shape[0], padw), f32)], axis=1)

    misc = jnp.concatenate([ent, x_diff, x_att], axis=1)   # (1, 1+out_dim+hc)
    pieces = [padcols(x_ass), padcols(ca), padcols(misc)]
    tail_rows = orows - (k + n + 1)
    if tail_rows > 0:
        pieces.append(jnp.zeros((tail_rows, LANE), f32))
    out_ref[...] = jnp.concatenate(pieces, axis=0)


# --------------------------------------------------------------------------
# Parameter construction (deterministic, synthetic)
# --------------------------------------------------------------------------
def init_params(key, input_dim, hidden_dim, output_dim, num_clusters):
    hc = hidden_dim // 2                 # DiffPool hidden_channels
    k2 = ceil(num_clusters / 2)          # DiffPool num_clusters
    c1 = ceil(k2 / 2)                    # pool1 clusters
    c2 = ceil(k2 / 4)                    # pool2 clusters

    keys = jax.random.split(key, 12)
    scale = 0.1
    return {
        # PGP
        "fc1_w": scale * jax.random.normal(keys[0], (input_dim, hidden_dim), jnp.float32),
        "fc1_b": jnp.zeros((hidden_dim,), jnp.float32),
        "cl_w": scale * jax.random.normal(keys[1], (hidden_dim, num_clusters), jnp.float32),
        "cl_b": jnp.zeros((num_clusters,), jnp.float32),
        # fc2 exists in the torch module but x_o / x_mean are never returned,
        # so it is dead code and not packed into the kernel's parameter slab.
        "fc2_w": scale * jax.random.normal(keys[2], (hidden_dim, output_dim), jnp.float32),
        "fc2_b": jnp.zeros((output_dim,), jnp.float32),
        # DiffPool.pool1
        "p1_gcn_w": scale * jax.random.normal(keys[3], (hidden_dim, hc), jnp.float32),
        "p1_gcn_b": jnp.zeros((hc,), jnp.float32),
        "p1_cl_w": scale * jax.random.normal(keys[4], (hc, c1), jnp.float32),
        "p1_cl_b": jnp.zeros((c1,), jnp.float32),
        # DiffPool.pool2
        "p2_gcn_w": scale * jax.random.normal(keys[5], (hidden_dim, hc), jnp.float32),
        "p2_gcn_b": jnp.zeros((hc,), jnp.float32),
        "p2_cl_w": scale * jax.random.normal(keys[6], (hc, c2), jnp.float32),
        "p2_cl_b": jnp.zeros((c2,), jnp.float32),
        # DiffPool.gcn1
        "g1_w": scale * jax.random.normal(keys[7], (hidden_dim, hc), jnp.float32),
        "g1_b": jnp.zeros((hc,), jnp.float32),
        # DiffPool.fc
        "fc_w": scale * jax.random.normal(keys[8], (hc, output_dim), jnp.float32),
        "fc_b": jnp.zeros((output_dim,), jnp.float32),
    }


# --------------------------------------------------------------------------
# Batched forward: x (B, N, D_in), adj (B, N, N).  One pallas_call, grid=(B,),
# batch axis "parallel" (2 TensorCores on v7x), parameters resident in VMEM.
# --------------------------------------------------------------------------
@jax.jit
def pgp_forward_batched(x, adj_dense, params):
    x = jnp.asarray(x, jnp.float32)
    adj = jnp.asarray(adj_dense, jnp.float32)
    B, n, din = x.shape
    hidden = params["fc1_w"].shape[1]
    k = params["cl_w"].shape[1]
    hc = params["p1_gcn_w"].shape[1]
    c1 = params["p1_cl_w"].shape[1]
    c2 = params["p2_cl_w"].shape[1]
    out_dim = params["fc_w"].shape[1]

    layout, prows = _param_layout(din, hidden, k, hc, c1, c2, out_dim)
    w_slab = _pack_params(params, layout, prows)

    nr = _ru8(n)
    drows = 2 * nr
    data = jnp.zeros((B, drows, LANE), jnp.float32)
    data = data.at[:, 0:n, 0:din].set(x)
    data = data.at[:, nr:nr + n, 0:n].set(adj)

    orows = _ru8(k + n + 1)
    cfg = dict(n=n, input_dim=din, hidden=hidden, k=k, hc=hc, c1=c1, c2=c2,
               out_dim=out_dim, adj_row0=nr, orows=orows)
    kernel = functools.partial(_pgp_fused_kernel, cfg=cfg, layout=layout)

    out = pl.pallas_call(
        kernel,
        out_shape=jax.ShapeDtypeStruct((B, orows, LANE), jnp.float32),
        grid=(B,),
        in_specs=[
            pl.BlockSpec((None, drows, LANE), lambda b: (b, 0, 0)),   # per-graph data
            pl.BlockSpec((prows, LANE), lambda b: (0, 0)),            # params (resident)
        ],
        out_specs=pl.BlockSpec((None, orows, LANE), lambda b: (b, 0, 0)),
        compiler_params=pltpu.CompilerParams(
            dimension_semantics=("parallel",)),
    )(data, w_slab)

    # Split the packed output slab back into the 5 module outputs.
    x_ass = out[:, 0:k, 0:hidden]                       # (B, K, hidden)
    ca = out[:, k:k + n, 0:k]                           # (B, N, K)
    misc = out[:, k + n, :]                             # (B, 128)
    ent = misc[:, 0]                                    # (B,)
    x_diff = misc[:, 1:1 + out_dim]                     # (B, out_dim)
    x_att = misc[:, 1 + out_dim:1 + out_dim + hc][:, None, :]   # (B, 1, hc)
    return x_ass, ca, ent, x_diff, x_att


def pgp_forward(x, adj_dense, params):
    """Single-graph convenience wrapper matching the torch PGP.forward outputs."""
    x_ass, ca, ent, x_diff, x_att = pgp_forward_batched(x[None], adj_dense[None], params)
    return x_ass[0], ca[0], ent[0], x_diff[0], x_att[0]


if __name__ == "__main__":
    # Small deterministic problem sizes consistent with the module.
    B = 2             # batch of graphs (amortizes the fixed pallas_call cost)
    N = 8             # nodes per graph
    INPUT_DIM = 16
    HIDDEN_DIM = 32
    OUTPUT_DIM = 4
    NUM_CLUSTERS = 16
    HC = HIDDEN_DIM // 2

    key = jax.random.PRNGKey(0)
    k_x, k_a, k_p = jax.random.split(key, 3)

    x = jax.random.normal(k_x, (B, N, INPUT_DIM), jnp.float32)
    a = (jax.random.uniform(k_a, (B, N, N)) > 0.5).astype(jnp.float32)
    adj_dense = ((a + jnp.transpose(a, (0, 2, 1))) > 0).astype(jnp.float32)

    params = init_params(k_p, INPUT_DIM, HIDDEN_DIM, OUTPUT_DIM, NUM_CLUSTERS)

    outs = pgp_forward_batched(x, adj_dense, params)
    outs = jax.block_until_ready(outs)
    x_ass, cluster_assignments, entropy_mean, x_diff_o, x_att_combine = outs

    assert x_ass.shape == (B, NUM_CLUSTERS, HIDDEN_DIM)
    assert cluster_assignments.shape == (B, N, NUM_CLUSTERS)
    assert entropy_mean.shape == (B,)
    assert x_diff_o.shape == (B, OUTPUT_DIM)
    assert x_att_combine.shape == (B, 1, HC)
    assert bool(jnp.all(jnp.isfinite(x_ass)))
    assert bool(jnp.all(jnp.isfinite(cluster_assignments)))
    assert bool(jnp.all(jnp.isfinite(x_diff_o)))
    # softmax rows must sum to ~1
    assert bool(jnp.allclose(jnp.sum(cluster_assignments, axis=-1), 1.0, atol=1e-5))

    # Single-graph wrapper sanity check.
    xa0, ca0, e0, xd0, xatt0 = pgp_forward(x[0], adj_dense[0], params)
    assert xa0.shape == (NUM_CLUSTERS, HIDDEN_DIM) and xd0.shape == (OUTPUT_DIM,)

    print("KERNEL_OK")
</pallas_src>

<mosaic_0001>
module attributes {stable_mosaic.version = 11 : i64} {
  func.func @_pgp_fused_kernel(%arg0: i32, %arg1: memref<1x16x128xf32, #tpu.memory_space<vmem>>, %arg2: memref<256x128xf32, #tpu.memory_space<vmem>>, %arg3: memref<1x32x128xf32, #tpu.memory_space<vmem>>) attributes {dimension_semantics = [#tpu.dimension_semantics<parallel>], iteration_bounds = array<i64: 2>, scalar_prefetch = 0 : i64, scratch_operands = 0 : i64, tpu.core_type = #tpu.core_type<tc>, window_params = [{transform_indices = @transform_0, window_bounds = array<i64: 1, 16, 128>}, {pipeline_mode = #tpu.pipeline_mode<synchronous>, transform_indices = @transform_1, window_bounds = array<i64: 256, 128>}, {transform_indices = @transform_2, window_bounds = array<i64: 1, 32, 128>}]} {
    %c0 = arith.constant 0 : index
    %c0_0 = arith.constant 0 : index
    %c0_1 = arith.constant 0 : index
    %0 = vector.load %arg1[%c0, %c0_0, %c0_1] : memref<1x16x128xf32, #tpu.memory_space<vmem>>, vector<1x8x16xf32>
    %1 = vector.shape_cast %0 : vector<1x8x16xf32> to vector<8x16xf32>
    %c0_2 = arith.constant 0 : index
    %c8 = arith.constant 8 : index
    %c0_3 = arith.constant 0 : index
    %2 = vector.load %arg1[%c0_2, %c8, %c0_3] : memref<1x16x128xf32, #tpu.memory_space<vmem>>, vector<1x8x8xf32>
    %3 = vector.shape_cast %2 : vector<1x8x8xf32> to vector<8x8xf32>
    %c0_4 = arith.constant 0 : index
    %c0_5 = arith.constant 0 : index
    %4 = vector.load %arg2[%c0_4, %c0_5] : memref<256x128xf32, #tpu.memory_space<vmem>>, vector<16x32xf32>
    %cst = arith.constant dense<0.000000e+00> : vector<8x32xf32>
    %5 = tpu.matmul %1, %4, %cst {dimension_numbers = #tpu.dot_dimension_numbers<[1], [0], [0], [1], [0, 0, 1, 1], [], []>} : vector<8x16xf32>, vector<16x32xf32>, vector<8x32xf32> -> vector<8x32xf32>
    %c16 = arith.constant 16 : index
    %c0_6 = arith.constant 0 : index
    %6 = vector.load %arg2[%c16, %c0_6] : memref<256x128xf32, #tpu.memory_space<vmem>>, vector<1x32xf32>
    %7 = vector.broadcast %6 : vector<1x32xf32> to vector<8x32xf32>
    %8 = arith.addf %5, %7 : vector<8x32xf32>
    %cst_7 = arith.constant 0.000000e+00 : f32
    %9 = vector.broadcast %cst_7 : f32 to vector<8x32xf32>
    %10 = arith.maximumf %8, %9 : vector<8x32xf32>
    %c24 = arith.constant 24 : index
    %c0_8 = arith.constant 0 : index
    %11 = vector.load %arg2[%c24, %c0_8] : memref<256x128xf32, #tpu.memory_space<vmem>>, vector<32x16xf32>
    %cst_9 = arith.constant dense<0.000000e+00> : vector<8x16xf32>
    %12 = tpu.matmul %10, %11, %cst_9 {dimension_numbers = #tpu.dot_dimension_numbers<[1], [0], [0], [1], [0, 0, 1, 1], [], []>} : vector<8x32xf32>, vector<32x16xf32>, vector<8x16xf32> -> vector<8x16xf32>
    %c56 = arith.constant 56 : index
    %c0_10 = arith.constant 0 : index
    %13 = vector.load %arg2[%c56, %c0_10] : memref<256x128xf32, #tpu.memory_space<vmem>>, vector<1x16xf32>
    %14 = vector.broadcast %13 : vector<1x16xf32> to vector<8x16xf32>
    %15 = arith.addf %12, %14 : vector<8x16xf32>
    %cst_11 = arith.constant dense<0xFF800000> : vector<8xf32>
    %16 = vector.multi_reduction <maximumf>, %15, %cst_11 [1] : vector<8x16xf32> to vector<8xf32>
    %17 = vector.shape_cast %16 : vector<8xf32> to vector<8x1xf32>
    %18 = vector.broadcast %17 : vector<8x1xf32> to vector<8x16xf32>
    %19 = arith.subf %15, %18 : vector<8x16xf32>
    %20 = math.exp %19 : vector<8x16xf32>
    %cst_12 = arith.constant dense<0.000000e+00> : vector<8xf32>
    %21 = vector.multi_reduction <add>, %20, %cst_12 [1] : vector<8x16xf32> to vector<8xf32>
    %22 = vector.shape_cast %21 : vector<8xf32> to vector<8x1xf32>
    %23 = vector.broadcast %22 : vector<8x1xf32> to vector<8x16xf32>
    %24 = arith.divf %20, %23 : vector<8x16xf32>
    %25 = tpu.concatenate %10, %3 in 1 : vector<8x32xf32>, vector<8x8xf32> -> vector<8x40xf32>
    %cst_13 = arith.constant dense<0.000000e+00> : vector<16x40xf32>
    %26 = tpu.matmul %24, %25, %cst_13 {dimension_numbers = #tpu.dot_dimension_numbers<[0], [0], [1], [1], [0, 1, 1, 1], [], []>} : vector<8x16xf32>, vector<8x40xf32>, vector<16x40xf32> -> vector<16x40xf32>
    %27 = vector.extract_strided_slice %26 {offsets = [0, 0], sizes = [16, 32], strides = [1, 1]} : vector<16x40xf32> to vector<16x32xf32>
    %28 = vector.extract_strided_slice %26 {offsets = [0, 32], sizes = [16, 8], strides = [1, 1]} : vector<16x40xf32> to vector<16x8xf32>
    %cst_14 = arith.constant dense<0.000000e+00> : vector<16x16xf32>
    %29 = tpu.matmul %28, %24, %cst_14 {dimension_numbers = #tpu.dot_dimension_numbers<[1], [0], [0], [1], [0, 0, 1, 1], [], []>} : vector<16x8xf32>, vector<8x16xf32>, vector<16x16xf32> -> vector<16x16xf32>
    %cst_15 = arith.constant dense<0xFF800000> : vector<8xf32>
    %30 = vector.multi_reduction <maximumf>, %24, %cst_15 [1] : vector<8x16xf32> to vector<8xf32>
    %31 = vector.shape_cast %30 : vector<8xf32> to vector<8x1xf32>
    %32 = vector.broadcast %31 : vector<8x1xf32> to vector<8x16xf32>
    %33 = arith.subf %24, %32 : vector<8x16xf32>
    %34 = math.exp %33 : vector<8x16xf32>
    %cst_16 = arith.constant dense<0.000000e+00> : vector<8xf32>
    %35 = vector.multi_reduction <add>, %34, %cst_16 [1] : vector<8x16xf32> to vector<8xf32>
    %36 = vector.shape_cast %35 : vector<8xf32> to vector<8x1xf32>
    %37 = vector.broadcast %36 : vector<8x1xf32> to vector<8x16xf32>
    %38 = arith.divf %34, %37 : vector<8x16xf32>
    %cst_17 = arith.constant 1.000000e-10 : f32
    %39 = vector.broadcast %cst_17 : f32 to vector<8x16xf32>
    %40 = arith.addf %38, %39 : vector<8x16xf32>
    %41 = math.log %40 : vector<8x16xf32>
    %42 = arith.mulf %38, %41 : vector<8x16xf32>
    %cst_18 = arith.constant dense<0.000000e+00> : vector<8xf32>
    %43 = vector.multi_reduction <add>, %42, %cst_18 [1] : vector<8x16xf32> to vector<8xf32>
    %44 = vector.shape_cast %43 : vector<8xf32> to vector<8x1xf32>
    %cst_19 = arith.constant 0.000000e+00 : f32
    %45 = vector.broadcast %cst_19 : f32 to vector<8x1xf32>
    %46 = arith.subf %45, %44 : vector<8x1xf32>
    %cst_20 = arith.constant dense<0.000000e+00> : vector<1xf32>
    %47 = vector.multi_reduction <add>, %46, %cst_20 [0] : vector<8x1xf32> to vector<1xf32>
    %48 = vector.shape_cast %47 : vector<1xf32> to vector<1x1xf32>
    %cst_21 = arith.constant 8.000000e+00 : f32
    %49 = vector.broadcast %cst_21 : f32 to vector<1x1xf32>
    %50 = arith.divf %48, %49 : vector<1x1xf32>
    %c64 = arith.constant 64 : index
    %c0_22 = arith.constant 0 : index
    %51 = vector.load %arg2[%c64, %c0_22] : memref<256x128xf32, #tpu.memory_space<vmem>>, vector<32x16xf32>
    %c96 = arith.constant 96 : index
    %c0_23 = arith.constant 0 : index
    %52 = vector.load %arg2[%c96, %c0_23] : memref<256x128xf32, #tpu.memory_space<vmem>>, vector<1x16xf32>
    %cst_24 = arith.constant dense<0.000000e+00> : vector<16xf32>
    %53 = vector.multi_reduction <add>, %29, %cst_24 [1] : vector<16x16xf32> to vector<16xf32>
    %54 = vector.shape_cast %53 : vector<16xf32> to vector<16x1xf32>
    %cst_25 = arith.constant 1.000000e+00 : f32
    %55 = vector.broadcast %cst_25 : f32 to vector<16x1xf32>
    %56 = arith.addf %54, %55 : vector<16x1xf32>
    %57 = math.rsqrt %56 : vector<16x1xf32>
    %cst_26 = arith.constant dense<0.000000e+00> : vector<16x16xf32>
    %58 = tpu.matmul %27, %51, %cst_26 {dimension_numbers = #tpu.dot_dimension_numbers<[1], [0], [0], [1], [0, 0, 1, 1], [], []>} : vector<16x32xf32>, vector<32x16xf32>, vector<16x16xf32> -> vector<16x16xf32>
    %59 = vector.broadcast %57 : vector<16x1xf32> to vector<16x16xf32>
    %60 = arith.mulf %59, %58 : vector<16x16xf32>
    %cst_27 = arith.constant dense<0.000000e+00> : vector<16x16xf32>
    %61 = tpu.matmul %29, %60, %cst_27 {dimension_numbers = #tpu.dot_dimension_numbers<[1], [0], [0], [1], [0, 0, 1, 1], [], []>} : vector<16x16xf32>, vector<16x16xf32>, vector<16x16xf32> -> vector<16x16xf32>
    %62 = arith.addf %61, %60 : vector<16x16xf32>
    %63 = vector.broadcast %57 : vector<16x1xf32> to vector<16x16xf32>
    %64 = arith.mulf %63, %62 : vector<16x16xf32>
    %65 = vector.broadcast %52 : vector<1x16xf32> to vector<16x16xf32>
    %66 = arith.addf %64, %65 : vector<16x16xf32>
    %cst_28 = arith.constant 0.000000e+00 : f32
    %67 = vector.broadcast %cst_28 : f32 to vector<16x16xf32>
    %68 = arith.maximumf %66, %67 : vector<16x16xf32>
    %c104 = arith.constant 104 : index
    %c0_29 = arith.constant 0 : index
    %69 = vector.load %arg2[%c104, %c0_29] : memref<256x128xf32, #tpu.memory_space<vmem>>, vector<16x4xf32>
    %cst_30 = arith.constant dense<0.000000e+00> : vector<16x4xf32>
    %70 = tpu.matmul %68, %69, %cst_30 {dimension_numbers = #tpu.dot_dimension_numbers<[1], [0], [0], [1], [0, 0, 1, 1], [], []>} : vector<16x16xf32>, vector<16x4xf32>, vector<16x4xf32> -> vector<16x4xf32>
    %c120 = arith.constant 120 : index
    %c0_31 = arith.constant 0 : index
    %71 = vector.load %arg2[%c120, %c0_31] : memref<256x128xf32, #tpu.memory_space<vmem>>, vector<1x4xf32>
    %72 = vector.broadcast %71 : vector<1x4xf32> to vector<16x4xf32>
    %73 = arith.addf %70, %72 : vector<16x4xf32>
    %cst_32 = arith.constant dense<0xFF800000> : vector<16xf32>
    %74 = vector.multi_reduction <maximumf>, %73, %cst_32 [1] : vector<16x4xf32> to vector<16xf32>
    %75 = vector.shape_cast %74 : vector<16xf32> to vector<16x1xf32>
    %76 = vector.broadcast %75 : vector<16x1xf32> to vector<16x4xf32>
    %77 = arith.subf %73, %76 : vector<16x4xf32>
    %78 = math.exp %77 : vector<16x4xf32>
    %cst_33 = arith.constant dense<0.000000e+00> : vector<16xf32>
    %79 = vector.multi_reduction <add>, %78, %cst_33 [1] : vector<16x4xf32> to vector<16xf32>
    %80 = vector.shape_cast %79 : vector<16xf32> to vector<16x1xf32>
    %81 = vector.broadcast %80 : vector<16x1xf32> to vector<16x4xf32>
    %82 = arith.divf %78, %81 : vector<16x4xf32>
    %83 = tpu.concatenate %27, %29 in 1 : vector<16x32xf32>, vector<16x16xf32> -> vector<16x48xf32>
    %cst_34 = arith.constant dense<0.000000e+00> : vector<4x48xf32>
    %84 = tpu.matmul %82, %83, %cst_34 {dimension_numbers = #tpu.dot_dimension_numbers<[0], [0], [1], [1], [0, 1, 1, 1], [], []>} : vector<16x4xf32>, vector<16x48xf32>, vector<4x48xf32> -> vector<4x48xf32>
    %85 = vector.extract_strided_slice %84 {offsets = [0, 0], sizes = [4, 32], strides = [1, 1]} : vector<4x48xf32> to vector<4x32xf32>
    %86 = vector.extract_strided_slice %84 {offsets = [0, 32], sizes = [4, 16], strides = [1, 1]} : vector<4x48xf32> to vector<4x16xf32>
    %cst_35 = arith.constant dense<0.000000e+00> : vector<4x4xf32>
    %87 = tpu.matmul %86, %82, %cst_35 {dimension_numbers = #tpu.dot_dimension_numbers<[1], [0], [0], [1], [0, 0, 1, 1], [], []>} : vector<4x16xf32>, vector<16x4xf32>, vector<4x4xf32> -> vector<4x4xf32>
    %c128 = arith.constant 128 : index
    %c0_36 = arith.constant 0 : index
    %88 = vector.load %arg2[%c128, %c0_36] : memref<256x128xf32, #tpu.memory_space<vmem>>, vector<32x16xf32>
    %c160 = arith.constant 160 : index
    %c0_37 = arith.constant 0 : index
    %89 = vector.load %arg2[%c160, %c0_37] : memref<256x128xf32, #tpu.memory_space<vmem>>, vector<1x16xf32>
    %cst_38 = arith.constant dense<0.000000e+00> : vector<4xf32>
    %90 = vector.multi_reduction <add>, %87, %cst_38 [1] : vector<4x4xf32> to vector<4xf32>
    %91 = vector.shape_cast %90 : vector<4xf32> to vector<4x1xf32>
    %cst_39 = arith.constant 1.000000e+00 : f32
    %92 = vector.broadcast %cst_39 : f32 to vector<4x1xf32>
    %93 = arith.addf %91, %92 : vector<4x1xf32>
    %94 = math.rsqrt %93 : vector<4x1xf32>
    %cst_40 = arith.constant dense<0.000000e+00> : vector<4x16xf32>
    %95 = tpu.matmul %85, %88, %cst_40 {dimension_numbers = #tpu.dot_dimension_numbers<[1], [0], [0], [1], [0, 0, 1, 1], [], []>} : vector<4x32xf32>, vector<32x16xf32>, vector<4x16xf32> -> vector<4x16xf32>
    %96 = vector.broadcast %94 : vector<4x1xf32> to vector<4x16xf32>
    %97 = arith.mulf %96, %95 : vector<4x16xf32>
    %cst_41 = arith.constant dense<0.000000e+00> : vector<4x16xf32>
    %98 = tpu.matmul %87, %97, %cst_41 {dimension_numbers = #tpu.dot_dimension_numbers<[1], [0], [0], [1], [0, 0, 1, 1], [], []>} : vector<4x4xf32>, vector<4x16xf32>, vector<4x16xf32> -> vector<4x16xf32>
    %99 = arith.addf %98, %97 : vector<4x16xf32>
    %100 = vector.broadcast %94 : vector<4x1xf32> to vector<4x16xf32>
    %101 = arith.mulf %100, %99 : vector<4x16xf32>
    %102 = vector.broadcast %89 : vector<1x16xf32> to vector<4x16xf32>
    %103 = arith.addf %101, %102 : vector<4x16xf32>
    %cst_42 = arith.constant 0.000000e+00 : f32
    %104 = vector.broadcast %cst_42 : f32 to vector<4x16xf32>
    %105 = arith.maximumf %103, %104 : vector<4x16xf32>
    %c168 = arith.constant 168 : index
    %c0_43 = arith.constant 0 : index
    %106 = vector.load %arg2[%c168, %c0_43] : memref<256x128xf32, #tpu.memory_space<vmem>>, vector<16x2xf32>
    %cst_44 = arith.constant dense<0.000000e+00> : vector<4x2xf32>
    %107 = tpu.matmul %105, %106, %cst_44 {dimension_numbers = #tpu.dot_dimension_numbers<[1], [0], [0], [1], [0, 0, 1, 1], [], []>} : vector<4x16xf32>, vector<16x2xf32>, vector<4x2xf32> -> vector<4x2xf32>
    %c184 = arith.constant 184 : index
    %c0_45 = arith.constant 0 : index
    %108 = vector.load %arg2[%c184, %c0_45] : memref<256x128xf32, #tpu.memory_space<vmem>>, vector<1x2xf32>
    %109 = vector.broadcast %108 : vector<1x2xf32> to vector<4x2xf32>
    %110 = arith.addf %107, %109 : vector<4x2xf32>
    %cst_46 = arith.constant dense<0xFF800000> : vector<4xf32>
    %111 = vector.multi_reduction <maximumf>, %110, %cst_46 [1] : vector<4x2xf32> to vector<4xf32>
    %112 = vector.shape_cast %111 : vector<4xf32> to vector<4x1xf32>
    %113 = vector.broadcast %112 : vector<4x1xf32> to vector<4x2xf32>
    %114 = arith.subf %110, %113 : vector<4x2xf32>
    %115 = math.exp %114 : vector<4x2xf32>
    %cst_47 = arith.constant dense<0.000000e+00> : vector<4xf32>
    %116 = vector.multi_reduction <add>, %115, %cst_47 [1] : vector<4x2xf32> to vector<4xf32>
    %117 = vector.shape_cast %116 : vector<4xf32> to vector<4x1xf32>
    %118 = vector.broadcast %117 : vector<4x1xf32> to vector<4x2xf32>
    %119 = arith.divf %115, %118 : vector<4x2xf32>
    %120 = tpu.concatenate %85, %87 in 1 : vector<4x32xf32>, vector<4x4xf32> -> vector<4x36xf32>
    %cst_48 = arith.constant dense<0.000000e+00> : vector<2x36xf32>
    %121 = tpu.matmul %119, %120, %cst_48 {dimension_numbers = #tpu.dot_dimension_numbers<[0], [0], [1], [1], [0, 1, 1, 1], [], []>} : vector<4x2xf32>, vector<4x36xf32>, vector<2x36xf32> -> vector<2x36xf32>
    %122 = vector.extract_strided_slice %121 {offsets = [0, 0], sizes = [2, 32], strides = [1, 1]} : vector<2x36xf32> to vector<2x32xf32>
    %123 = vector.extract_strided_slice %121 {offsets = [0, 32], sizes = [2, 4], strides = [1, 1]} : vector<2x36xf32> to vector<2x4xf32>
    %cst_49 = arith.constant dense<0.000000e+00> : vector<2x2xf32>
    %124 = tpu.matmul %123, %119, %cst_49 {dimension_numbers = #tpu.dot_dimension_numbers<[1], [0], [0], [1], [0, 0, 1, 1], [], []>} : vector<2x4xf32>, vector<4x2xf32>, vector<2x2xf32> -> vector<2x2xf32>
    %c192 = arith.constant 192 : index
    %c0_50 = arith.constant 0 : index
    %125 = vector.load %arg2[%c192, %c0_50] : memref<256x128xf32, #tpu.memory_space<vmem>>, vector<32x16xf32>
    %c224 = arith.constant 224 : index
    %c0_51 = arith.constant 0 : index
    %126 = vector.load %arg2[%c224, %c0_51] : memref<256x128xf32, #tpu.memory_space<vmem>>, vector<1x16xf32>
    %cst_52 = arith.constant dense<0.000000e+00> : vector<2xf32>
    %127 = vector.multi_reduction <add>, %124, %cst_52 [1] : vector<2x2xf32> to vector<2xf32>
    %128 = vector.shape_cast %127 : vector<2xf32> to vector<2x1xf32>
    %cst_53 = arith.constant 1.000000e+00 : f32
    %129 = vector.broadcast %cst_53 : f32 to vector<2x1xf32>
    %130 = arith.addf %128, %129 : vector<2x1xf32>
    %131 = math.rsqrt %130 : vector<2x1xf32>
    %cst_54 = arith.constant dense<0.000000e+00> : vector<2x16xf32>
    %132 = tpu.matmul %122, %125, %cst_54 {dimension_numbers = #tpu.dot_dimension_numbers<[1], [0], [0], [1], [0, 0, 1, 1], [], []>} : vector<2x32xf32>, vector<32x16xf32>, vector<2x16xf32> -> vector<2x16xf32>
    %133 = vector.broadcast %131 : vector<2x1xf32> to vector<2x16xf32>
    %134 = arith.mulf %133, %132 : vector<2x16xf32>
    %cst_55 = arith.constant dense<0.000000e+00> : vector<2x16xf32>
    %135 = tpu.matmul %124, %134, %cst_55 {dimension_numbers = #tpu.dot_dimension_numbers<[1], [0], [0], [1], [0, 0, 1, 1], [], []>} : vector<2x2xf32>, vector<2x16xf32>, vector<2x16xf32> -> vector<2x16xf32>
    %136 = arith.addf %135, %134 : vector<2x16xf32>
    %137 = vector.broadcast %131 : vector<2x1xf32> to vector<2x16xf32>
    %138 = arith.mulf %137, %136 : vector<2x16xf32>
    %139 = vector.broadcast %126 : vector<1x16xf32> to vector<2x16xf32>
    %140 = arith.addf %138, %139 : vector<2x16xf32>
    %cst_56 = arith.constant 0.000000e+00 : f32
    %141 = vector.broadcast %cst_56 : f32 to vector<2x16xf32>
    %142 = arith.maximumf %140, %141 : vector<2x16xf32>
    %cst_57 = arith.constant dense<0.000000e+00> : vector<16xf32>
    %143 = vector.multi_reduction <add>, %68, %cst_57 [0] : vector<16x16xf32> to vector<16xf32>
    %144 = vector.shape_cast %143 : vector<16xf32> to vector<1x16xf32>
    %cst_58 = arith.constant 1.600000e+01 : f32
    %145 = vector.broadcast %cst_58 : f32 to vector<1x16xf32>
    %146 = arith.divf %144, %145 : vector<1x16xf32>
    %cst_59 = arith.constant dense<0.000000e+00> : vector<16xf32>
    %147 = vector.multi_reduction <add>, %105, %cst_59 [0] : vector<4x16xf32> to vector<16xf32>
    %148 = vector.shape_cast %147 : vector<16xf32> to vector<1x16xf32>
    %cst_60 = arith.constant 4.000000e+00 : f32
    %149 = vector.broadcast %cst_60 : f32 to vector<1x16xf32>
    %150 = arith.divf %148, %149 : vector<1x16xf32>
    %cst_61 = arith.constant dense<0.000000e+00> : vector<16xf32>
    %151 = vector.multi_reduction <add>, %142, %cst_61 [0] : vector<2x16xf32> to vector<16xf32>
    %152 = vector.shape_cast %151 : vector<16xf32> to vector<1x16xf32>
    %cst_62 = arith.constant 2.000000e+00 : f32
    %153 = vector.broadcast %cst_62 : f32 to vector<1x16xf32>
    %154 = arith.divf %152, %153 : vector<1x16xf32>
    %155 = arith.addf %146, %150 : vector<1x16xf32>
    %156 = arith.addf %155, %154 : vector<1x16xf32>
    %cst_63 = arith.constant 0.333333343 : f32
    %157 = vector.broadcast %cst_63 : f32 to vector<1x16xf32>
    %158 = arith.mulf %156, %157 : vector<1x16xf32>
    %c232 = arith.constant 232 : index
    %c0_64 = arith.constant 0 : index
    %159 = vector.load %arg2[%c232, %c0_64] : memref<256x128xf32, #tpu.memory_space<vmem>>, vector<16x4xf32>
    %cst_65 = arith.constant dense<0.000000e+00> : vector<1x4xf32>
    %160 = tpu.matmul %158, %159, %cst_65 {dimension_numbers = #tpu.dot_dimension_numbers<[1], [0], [0], [1], [0, 0, 1, 1], [], []>} : vector<1x16xf32>, vector<16x4xf32>, vector<1x4xf32> -> vector<1x4xf32>
    %c248 = arith.constant 248 : index
    %c0_66 = arith.constant 0 : index
    %161 = vector.load %arg2[%c248, %c0_66] : memref<256x128xf32, #tpu.memory_space<vmem>>, vector<1x4xf32>
    %162 = arith.addf %160, %161 : vector<1x4xf32>
    %163 = tpu.concatenate %50, %162, %158 in 1 : vector<1x1xf32>, vector<1x4xf32>, vector<1x16xf32> -> vector<1x21xf32>
    %cst_67 = arith.constant 0.000000e+00 : f32
    %164 = vector.broadcast %cst_67 : f32 to vector<16x96xf32>
    %165 = tpu.concatenate %27, %164 in 1 : vector<16x32xf32>, vector<16x96xf32> -> vector<16x128xf32>
    %cst_68 = arith.constant 0.000000e+00 : f32
    %166 = vector.broadcast %cst_68 : f32 to vector<8x112xf32>
    %167 = tpu.concatenate %24, %166 in 1 : vector<8x16xf32>, vector<8x112xf32> -> vector<8x128xf32>
    %cst_69 = arith.constant 0.000000e+00 : f32
    %168 = vector.broadcast %cst_69 : f32 to vector<1x107xf32>
    %169 = tpu.concatenate %163, %168 in 1 : vector<1x21xf32>, vector<1x107xf32> -> vector<1x128xf32>
    %cst_70 = arith.constant 0.000000e+00 : f32
    %170 = vector.broadcast %cst_70 : f32 to vector<7x128xf32>
    %171 = tpu.concatenate %165, %167, %169, %170 in 0 : vector<16x128xf32>, vector<8x128xf32>, vector<1x128xf32>, vector<7x128xf32> -> vector<32x128xf32>
    %c0_71 = arith.constant 0 : index
    %c0_72 = arith.constant 0 : index
    %c0_73 = arith.constant 0 : index
    %172 = vector.load %arg3[%c0_71, %c0_72, %c0_73] : memref<1x32x128xf32, #tpu.memory_space<vmem>>, vector<1x32x128xf32>
    %173 = vector.shape_cast %172 : vector<1x32x128xf32> to vector<32x128xf32>
    %174 = vector.shape_cast %171 : vector<32x128xf32> to vector<1x32x128xf32>
    tpu.vector_store %arg3[%c0_71, %c0_72, %c0_73], %174 {strides = array<i32>} : memref<1x32x128xf32, #tpu.memory_space<vmem>>, vector<1x32x128xf32>,
    return
  }
  func.func @transform_0(%arg0: i32) -> (i32, i32, i32) {
    %c0_i32 = arith.constant 0 : i32
    %c0_i32_0 = arith.constant 0 : i32
    %c0_i32_1 = arith.constant 0 : i32
    return %arg0, %c0_i32, %c0_i32_0 : i32, i32, i32
  }
  func.func @transform_1(%arg0: i32) -> (i32, i32) {
    %c0_i32 = arith.constant 0 : i32
    %c0_i32_0 = arith.constant 0 : i32
    %c0_i32_1 = arith.constant 0 : i32
    return %c0_i32, %c0_i32_0 : i32, i32
  }
  func.func @transform_2(%arg0: i32) -> (i32, i32, i32) {
    %c0_i32 = arith.constant 0 : i32
    %c0_i32_0 = arith.constant 0 : i32
    %c0_i32_1 = arith.constant 0 : i32
    return %arg0, %c0_i32, %c0_i32_0 : i32, i32, i32
  }
}

</mosaic_0001>

<bundles_post_ra>
// kernel: pgp_forward_batched.1
= control target key start
LH: loop header
LB: loop body
LE: loop exit
PB: predicated region body
PF: predicated region fallthrough
CT: control target
= control target key end

     0   :  { %s1226_s9 = smov 0   ;;  %s1446_s0 = inlined_call_operand.vmem [shape: f32[2,16,128], index: 0, kind: input, shape index: {}]   ;;  %s1447_s1 = inlined_call_operand.vmem [shape: f32[256,128], index: 1, kind: input, shape index: {}]   ;;  %s1448_s2 = inlined_call_operand.vmem [shape: f32[2,32,128], index: 2, kind: output, shape index: {}]  }
   0x1 LB: > { %s1089_s10 = sadd.s32 4294967295, %s1201_s9   ;;  %p1093_p0 = scmp.ge.s32.totalorder %s1201_s9, 1  ;;  %s1201_s9 = sphi %s1226_s9, %s12_s9  }
   0x2   : > { %p112_p1 = scmp.lt.s32.totalorder %s1201_s9, 3 }
   0x4   : > { %p113_p2 = pnand %p1093_p0, %p112_p1 }
   0x5   : > { %p134_p3 = scmp.lt.s32.totalorder (!%p113_p2), %s1089_s10, 1  ;;  %s1203_s21 = smov (!%p113_p2), 32  }
   0x6   : > { %116 = sbr.rel (%p113_p2) target bundleno = 4011 (0xfab), region = 28  ;;  %s1208_s3 = smov (!%p113_p2), 5  }
   0x7   : > { %s1209_s6 = smov (!%p113_p2), 1  }
   0xb   : > { %v147_v0 = vld [vmem:[%s1447_s1 + $0x8] sm:$0xff]  ;;  %v146_v1 = vld [vmem:[%s1447_s1] sm:$0xff]  ;;  %v178_v2 = vld [vmem:[%s1447_s1 + $0x30] sm:$0xff]  ;;  %s1450_s10 = smov (!%p134_p3, %s1089_s10), 1  ;;  %vm150_vm0 = vcmask 130048   ;;  %vm181_vm1 = vcmask 261120  }
   0xc   : > { %168 = vmatpush.msra.mxu0 %v147_v0  ;;  %197 = vmatpush.msra.mxu1 %v178_v2  ;;  %s1126_s17 = sshll.u32 %s1450_s10, 4  ;;  %v177_v5 = vld [vmem:[%s1447_s1 + $0x28] sm:$0xff]  ;;  %v176_v6 = vld [vmem:[%s1447_s1 + $0x20] sm:$0xff]  ;;  %v175_v7 = vld [vmem:[%s1447_s1 + $0x18] sm:$0xff]  ;;  %s1127_s4 = sshll.u32 %s1450_s10, 5  ;;  %vm266_vm6 = vcmask 64512  }
   0xd   : > { %s138_s20 = scalar_lea.vmem %s1446_s0, %s1126_s17  ;;  %v1150_v8 = vld [vmem:[%s1447_s1 + $0x10] ss:$0 sm:$0xff]  ;;  %v1151_v14 = vld [vmem:[%s1447_s1 + $0x38] ss:$0 sm:$0xff]  ;;  %s1274_s7 = scalar_lea.vmem %s1448_s2, %s1127_s4  ;;  %v376_v38 = vld [vmem:[%s1447_s1 + $0x48] sm:$0xff]  ;;  %vm506_vm13 = vcmask 31744  }
   0xe   : > { %169 = vmatpush.msra.mxu0 %v146_v1  ;;  %v144_v3 = vld [vmem:[%s138_s20] sm:$0xff]  ;;  %v145_v4 = vld [vmem:[%s138_s20 + $0x8] sm:$0xff]  ;;  %198 = vmatpush.msra.mxu1 %v177_v5  ;;  %v378_v36 = vld [vmem:[%s1447_s1 + $0x58] sm:$0xff]  ;;  %s1204_s17 = smov 96  }
   0xf   : > { %1098 = vmatmul.msk.f32.vlgmr.msra.gmra.mxu0 %vm150_vm0, %v144_v3  ;;  %230 = vrot.lane.b32.xlu1 %v145_v4, %s1203_s21  ;;  %v377_v37 = vld [vmem:[%s1447_s1 + $0x50] sm:$0xff]  ;;  %v375_v41 = vld [vmem:[%s1447_s1 + $0x40] sm:$0xff] }
  0x10   : > { %199 = vmatpush.msra.mxu1 %v176_v6  ;;  %424 = vmatpush.msrb.mxu0 %v378_v36 }
  0x12   : > { %200 = vmatpush.msra.mxu1 %v175_v7  ;;  %425 = vmatpush.msrb.mxu0 %v377_v37 }
  0x14   : > { %426 = vmatpush.msrb.mxu0 %v376_v38 }
  0x16   : > { %427 = vmatpush.msrb.mxu0 %v375_v41 }
  0x81   : > { %v231_v11 = vpop.permute.xlu1 %230 }
  0x8c   : > { %v171_v9 = vpop.f32.mrf.mxu0 }
  0x8d   : > { %v172_v10 = vadd.f32 %v1150_v8, %v171_v9 }
  0x8f   : > { %v174_v12 = vmax.f32 %v172_v10, 0.0  ;;  %v474_v10 = vld [vmem:[%s1447_s1 + $0x70] sm:$0xff] }
  0x91   : > { %1099 = vmatmul.msk.f32.vlgmr.msra.gmra.mxu1 %vm181_vm1, %v174_v12  ;;  %v233_v13 = vsel %vm181_vm1, %v174_v12, %v231_v11  ;;  %v473_v11 = vld [vmem:[%s1447_s1 + $0x68] sm:$0xff] }
  0x92   : > { %288 = vmatpush.msra.mxu2 %v233_v13 }
  0x94   : > { %497 = vmatpush.msrb.mxu2 %v474_v10 }
  0x96   : > { %498 = vmatpush.msrb.mxu2 %v473_v11 }
 0x10e   : > { %v202_v15 = vpop.f32.mrf.mxu1 }
 0x10f   : > { %v203_v16 = vadd.f32 %v1151_v14, %v202_v15  ;;  %v1152_v14 = vld [vmem:[%s1447_s1 + $0x60] ss:$0 sm:$0xff] }
 0x111   : > { %v205_v17 = vsel %vm150_vm0, %v203_v16, -inf }
 0x112   : > { %206 = vmax.xlane.f32.xlu0 %v205_v17 }
 0x185   : > { %v207_v18 = vpop.xlane.xlu0 %206 }
 0x186   : > { %v208_v19 = vsub.f32 %v203_v16, %v207_v18 }
 0x188   : > { %v209_v20 = vmul.f32 1.442695, %v208_v19 }
 0x18a   : > { %1157 = vpow2.f32 %v209_v20 }
 0x190   : > { %v1158_v21 = vpop.eup %1157 }
 0x191   : > { %v211_v22 = vsel %vm150_vm0, %v1158_v21, 0.0 }
 0x192   : > { %212 = vadd.xlane.f32.xlu0 %v211_v22 }
 0x205   : > { %v213_v23 = vpop.xlane.xlu0 %212 }
 0x206   : > { %1159 = vrcp.f32 %v213_v23  ;;  %v225_v27 = vand.u32 2147483648, %v213_v23  ;;  %v223_v29 = vand.u32 2147483647, %v213_v23  ;;  %vm219_vm3 = vweird.f32 %v213_v23 }
 0x208   : > { %v226_v31 = vor.u32 1.1754944e-38, %v225_v27  ;;  %vm224_vm5 = vcmp.eq.f32.partialorder %v223_v29, 8.507059e+37 }
 0x20c   : > { %v1160_v24 = vpop.eup %1159 }
 0x20d   : > { %v215_v25 = vmul.f32 %v1160_v24, %v213_v23  ;;  %vm220_vm2 = vweird.f32 %v1160_v24 }
 0x20e   : > { %vm221_vm4 = vmor %vm219_vm3, %vm220_vm2 }
 0x20f   : > { %v216_v26 = vsub.f32 1.0, %v215_v25 }
 0x211   : > { %v217_v28 = vmul.f32 %v1160_v24, %v216_v26  ;;  %v1153_v26 = vld [vmem:[%s1447_s1 + $0x78] ss:$0 sm:$0xff] }
 0x213   : > { %v218_v30 = vadd.f32 %v1160_v24, %v217_v28 }
 0x215   : > { %v222_v32 = vsel %vm221_vm4, %v1160_v24, %v218_v30 }
 0x216   : > { %v227_v33 = vsel %vm224_vm5, %v226_v31, %v222_v32 }
 0x217   : > { %v1276_v34 = vmul.f32 %v1158_v21, %v227_v33 }
 0x219   : > { %234 = vxpose.xlu1.b32.start.end [1/1] (short) (narrow) %v1276_v34, 16  ;;  %v1025_v35 = vsel %vm150_vm0, %v1276_v34, 0.0  ;;  %321 = vmatpush.msra.mxu3 %v1276_v34 }
 0x21a   : > { %1032 = vst [vmem:[%s1274_s7 + $0x10] sm:$0xff] %v1025_v35 }
 0x2bd   : > { %v250_v39 = vpop.trf.xlu1 }
 0x2be   : > { %1100 = vmatmul.msk.f32.vlgmr.msra.gmra.mxu2 %vm266_vm6, %v250_v39 }
 0x2c5   : > { %v251_v40 = vpop.trf.xlu1 }
 0x2c6   : > { %1101 = vmatmul.msk.f32.gmra.mxu2 %vm266_vm6, %v251_v40 }
 0x341   : > { %v1297_v42 = vpop.f32.mrf.mxu2 }
 0x342   : > { %v1023_v43 = vsel %vm181_vm1, %v1297_v42, 0.0  ;;  %298 = vrot.lane.b32.xlu2 %v1297_v42, %s1204_s17  ;;  %1104 = vmatmul.msk.f32.vlgmr.msrb.gmra.mxu0 %vm181_vm1, %v1297_v42 }
 0x343   : > { %1030 = vst [vmem:[%s1274_s7] sm:$0xff] %v1023_v43 }
 0x349   : > { %v1306_v44 = vpop.f32.mrf.mxu2 }
 0x34a   : > { %v1024_v45 = vsel %vm181_vm1, %v1306_v44, 0.0  ;;  %300 = vrot.lane.b32.xlu2 %v1306_v44, %s1204_s17  ;;  %1105 = vmatmul.msk.f32.gmra.mxu0 %vm181_vm1, %v1306_v44 }
 0x34b   : > { %1031 = vst [vmem:[%s1274_s7 + $0x8] sm:$0xff] %v1024_v45 }
 0x39c   : > { %v299_v46 = vpop.permute.xlu2 %298 }
 0x39d   : > { %1102 = vmatmul.msk.f32.vlgmr.msra.gmra.mxu3 %vm266_vm6, %v299_v46 }
 0x3a4   : > { %v301_v47 = vpop.permute.xlu2 %300 }
 0x3a5   : > { %1103 = vmatmul.msk.f32.gmra.mxu3 %vm266_vm6, %v301_v47 }
 0x3bf   : > { %v429_v61 = vpop.f32.mrf.mxu0 }
 0x3c7   : > { %v432_v5 = vpop.f32.mrf.mxu0 }
 0x420   : > { %v1317_v48 = vpop.f32.mrf.mxu3 }
 0x421   : > { %v380_v49 = vsel %vm150_vm0, %v1317_v48, 0.0 }
 0x422   : > { %381 = vadd.xlane.f32.xlu2 %v380_v49 }
 0x428   : > { %v1321_v50 = vpop.f32.mrf.mxu3 }
 0x429   : > { %v383_v51 = vsel %vm150_vm0, %v1321_v50, 0.0  ;;  %v1145_v46 = vpack.i.bf16 %v1317_v48, %v1321_v50 }
 0x42a   : > { %384 = vadd.xlane.f32.xlu0 %v383_v51 }
 0x495   : > { %v382_v52 = vpop.xlane.xlu2 %381 }
 0x496   : > { %v386_v53 = vadd.f32 1.0, %v382_v52 }
 0x498   : > { %1161 = vrsqrt.f32 %v386_v53  ;;  %vm394_vm9 = vweird.f32 %v386_v53 }
 0x49d   : > { %v385_v54 = vpop.xlane.xlu0 %384 }
 0x49e   : > { %v1162_v55 = vpop.eup %1161  ;;  %v387_v56 = vadd.f32 1.0, %v385_v54 }
 0x49f   : > { %v389_v57 = vmul.f32 %v1162_v55, %v386_v53  ;;  %vm395_vm7 = vweird.f32 %v1162_v55 }
 0x4a0   : > { %1163 = vrsqrt.f32 %v387_v56  ;;  %vm404_vm10 = vweird.f32 %v387_v56  ;;  %vm396_vm11 = vmor %vm394_vm9, %vm395_vm7 }
 0x4a1   : > { %v390_v58 = vmul.f32 %v1162_v55, %v389_v57 }
 0x4a3   : > { %v391_v59 = vmul.f32 0.5, %v390_v58 }
 0x4a5   : > { %v392_v63 = vsub.f32 1.5, %v391_v59 }
 0x4a6   : > { %v1164_v60 = vpop.eup %1163 }
 0x4a7   : > { %v399_v62 = vmul.f32 %v1164_v60, %v387_v56  ;;  %vm405_vm8 = vweird.f32 %v1164_v60  ;;  %v393_v3 = vmul.f32 %v1162_v55, %v392_v63 }
 0x4a8   : > { %vm406_vm12 = vmor %vm404_vm10, %vm405_vm8  ;;  %vm648_vm8 = vcmask 27648  }
 0x4a9   : > { %v400_v0 = vmul.f32 %v1164_v60, %v399_v62  ;;  %v397_v7 = vsel %vm396_vm11, %v1162_v55, %v393_v3 }
 0x4aa   : > { %v435_v9 = vmul.f32 %v429_v61, %v397_v7 }
 0x4ab   : > { %v401_v1 = vmul.f32 0.5, %v400_v0 }
 0x4ad   : > { %v402_v2 = vsub.f32 1.5, %v401_v1 }
 0x4af   : > { %v403_v4 = vmul.f32 %v1164_v60, %v402_v2 }
 0x4b1   : > { %v407_v6 = vsel %vm406_vm12, %v1164_v60, %v403_v4  ;;  %vm689_vm12 = vcmask 1043456  }
 0x4b2   : > { %v436_v8 = vmul.f32 %v432_v5, %v407_v6 }
 0x4b4   : > { %457 = vmatpush.msrb.mxu1 %v436_v8 }
 0x4b6   : > { %458 = vmatpush.msrb.mxu1 %v435_v9 }
 0x4b7   : > { %1106 = vmatmul.msk.f32.vlgmr.msrb.gmra.mxu1 %vm150_vm0, %v1317_v48 }
 0x4bf   : > { %1107 = vmatmul.msk.f32.gmra.mxu1 %vm150_vm0, %v1321_v50 }
 0x534   : > { %v460_v12 = vpop.f32.mrf.mxu1 }
 0x535   : > { %v461_v13 = vadd.f32 %v460_v12, %v435_v9  ;;  %v646_v12 = vld [vmem:[%s1447_s1 + $0x98] sm:$0xff] }
 0x536   : > { %677 = vmatpush.msra.mxu0 %v646_v12 }
 0x537   : > { %v466_v15 = vmul.f32 %v461_v13, %v397_v7  ;;  %v645_v13 = vld [vmem:[%s1447_s1 + $0x90] sm:$0xff] }
 0x538   : > { %678 = vmatpush.msra.mxu0 %v645_v13 }
 0x539   : > { %v469_v16 = vadd.f32 %v1152_v14, %v466_v15 }
 0x53b   : > { %v471_v17 = vmax.f32 %v469_v16, 0.0 }
 0x53c   : > { %v463_v18 = vpop.f32.mrf.mxu1 }
 0x53d   : > { %v464_v19 = vadd.f32 %v463_v18, %v436_v8  ;;  %1108 = vmatmul.msk.f32.vlgmr.msrb.gmra.mxu2 %vm150_vm0, %v471_v17  ;;  %v934_v23 = vsel %vm150_vm0, %v471_v17, 0.0 }
 0x53f   : > { %v467_v20 = vmul.f32 %v464_v19, %v407_v6 }
 0x541   : > { %v470_v21 = vadd.f32 %v1152_v14, %v467_v20 }
 0x543   : > { %v472_v22 = vmax.f32 %v470_v21, 0.0 }
 0x545   : > { %1109 = vmatmul.msk.f32.gmra.mxu2 %vm150_vm0, %v472_v22  ;;  %v935_v24 = vsel %vm150_vm0, %v472_v22, 0.0 }
 0x546   : > { %v1342_v25 = vadd.f32 %v935_v24, %v934_v23 }
 0x5c0   : > { %v500_v27 = vpop.f32.mrf.mxu2 }
 0x5c1   : > { %v501_v28 = vadd.f32 %v1153_v26, %v500_v27 }
 0x5c3   : > { %v507_v29 = vsel %vm506_vm13, %v501_v28, -inf }
 0x5c4   : > { %508 = vmax.xlane.f32.xlu0 %v507_v29 }
 0x5c8   : > { %v503_v30 = vpop.f32.mrf.mxu2 }
 0x5c9   : > { %v504_v31 = vadd.f32 %v1153_v26, %v503_v30 }
 0x5cb   : > { %v510_v32 = vsel %vm506_vm13, %v504_v31, -inf }
 0x5cc   : > { %511 = vmax.xlane.f32.xlu0 %v510_v32  ;;  %v717_v32 = vld [vmem:[%s1447_s1 + $0xa8] sm:$0xff] }
 0x637   : > { %v509_v33 = vpop.xlane.xlu0 %508 }
 0x638   : > { %v513_v35 = vsub.f32 %v501_v28, %v509_v33  ;;  %v1205_v33 = vmov 16.0  }
 0x63a   : > { %v515_v36 = vmul.f32 1.442695, %v513_v35  ;;  %v1206_v35 = vmov 4.0  }
 0x63c   : > { %1165 = vpow2.f32 %v515_v36  ;;  %v937_v36 = vrot.slane %v1342_v25, 4 }
 0x63f   : > { %v512_v37 = vpop.xlane.xlu0 %511 }
 0x640   : > { %v514_v38 = vsub.f32 %v504_v31, %v512_v37  ;;  %v718_v31 = vld [vmem:[%s1447_s1 + $0xb0] sm:$0xff] }
 0x641   : > { %738 = vmatpush.msra.mxu2 %v718_v31 }
 0x642   : > { %v1166_v39 = vpop.eup %1165  ;;  %v517_v40 = vmul.f32 1.442695, %v514_v38 }
 0x643   : > { %v519_v41 = vsel %vm506_vm13, %v1166_v39, 0.0  ;;  %739 = vmatpush.msra.mxu2 %v717_v32  ;;  %v862_v32 = vld [vmem:[%s1447_s1 + $0xd8] sm:$0xff] }
 0x644   : > { %1167 = vpow2.f32 %v517_v40  ;;  %520 = vadd.xlane.f32.xlu0 %v519_v41  ;;  %v1154_v41 = vld [vmem:[%s1447_s1 + $0xa0] ss:$0 sm:$0xff] }
 0x64a   : > { %v1168_v43 = vpop.eup %1167 }
 0x64b   : > { %v522_v45 = vsel %vm506_vm13, %v1168_v43, 0.0 }
 0x64c   : > { %523 = vadd.xlane.f32.xlu0 %v522_v45 }
 0x660   : > { %1146 = vrot.lane.b32.xlu0 %v1145_v46, %s1203_s21 }
 0x6b7   : > { %v521_v47 = vpop.xlane.xlu0 %520 }
 0x6b8   : > { %1169 = vrcp.f32 %v521_v47  ;;  %v536_v54 = vand.u32 2147483648, %v521_v47  ;;  %v534_v56 = vand.u32 2147483647, %v521_v47  ;;  %vm530_vm15 = vweird.f32 %v521_v47 }
 0x6ba   : > { %v537_v59 = vor.u32 1.1754944e-38, %v536_v54  ;;  %vm535_vm3 = vcmp.eq.f32.partialorder %v534_v56, 8.507059e+37 }
 0x6be   : > { %v1170_v49 = vpop.eup %1169 }
 0x6bf   : > { %v526_v51 = vmul.f32 %v1170_v49, %v521_v47  ;;  %v524_v52 = vpop.xlane.xlu0 %523  ;;  %vm531_vm14 = vweird.f32 %v1170_v49 }
 0x6c0   : > { %1171 = vrcp.f32 %v524_v52  ;;  %vm532_vm2 = vmor %vm530_vm15, %vm531_vm14  ;;  %v551_v63 = vand.u32 2147483648, %v524_v52  ;;  %v549_v1 = vand.u32 2147483647, %v524_v52  ;;  %vm545_vm5 = vweird.f32 %v524_v52 }
 0x6c1   : > { %v527_v53 = vsub.f32 1.0, %v526_v51  ;;  %vm951_vm14 = vcmask 125952  }
 0x6c2   : > { %v552_v3 = vor.u32 1.1754944e-38, %v551_v63  ;;  %vm550_vm7 = vcmp.eq.f32.partialorder %v549_v1, 8.507059e+37 }
 0x6c3   : > { %v528_v55 = vmul.f32 %v1170_v49, %v527_v53 }
 0x6c5   : > { %v529_v57 = vadd.f32 %v1170_v49, %v528_v55 }
 0x6c6   : > { %v1172_v58 = vpop.eup %1171 }
 0x6c7   : > { %v541_v60 = vmul.f32 %v1172_v58, %v524_v52  ;;  %v533_v48 = vsel %vm532_vm2, %v1170_v49, %v529_v57  ;;  %vm546_vm4 = vweird.f32 %v1172_v58 }
 0x6c8   : > { %v538_v50 = vsel %vm535_vm3, %v537_v59, %v533_v48  ;;  %vm547_vm6 = vmor %vm545_vm5, %vm546_vm4  ;;  %vm744_vm3 = vcmask 11264  }
 0x6c9   : > { %v542_v61 = vsub.f32 1.0, %v541_v60  ;;  %v539_v62 = vmul.f32 %v1166_v39, %v538_v50 }
 0x6cb   : > { %v543_v0 = vmul.f32 %v1172_v58, %v542_v61  ;;  %563 = vxpose.xlu2.b32.start [1/2] (short) (narrow) %v539_v62, 8 }
 0x6cd   : > { %v544_v2 = vadd.f32 %v1172_v58, %v543_v0 }
 0x6cf   : > { %v548_v4 = vsel %vm547_vm6, %v1172_v58, %v544_v2 }
 0x6d0   : > { %v553_v5 = vsel %vm550_vm7, %v552_v3, %v548_v4 }
 0x6d1   : > { %v554_v6 = vmul.f32 %v1168_v43, %v553_v5  ;;  %v938_v43 = vadd.f32 %v937_v36, %v1342_v25 }
 0x6d2   : > { %v1147_v7 = vpop.permute.xlu0 %1146 }
 0x6d3   : > { %v1149_v8 = vunpack.i.h.bf16 %v1147_v7  ;;  %v1148_v9 = vunpack.i.l.bf16 %v1147_v7  ;;  %564 = vxpose.xlu2.b32.end [2/2] (short) (narrow) %v554_v6, 8  ;;  %v939_v51 = vrot.slane %v938_v43, 2  ;;  %v1155_v7 = vld [vmem:[%s1447_s1 + $0xb8] ss:$0 sm:$0xff] }
 0x6d5   : > { %v562_v10 = vsel %vm181_vm1, %v1306_v44, %v1148_v9  ;;  %v561_v11 = vsel %vm181_vm1, %v1297_v42, %v1149_v8  ;;  %v644_v44 = vld [vmem:[%s1447_s1 + $0x88] sm:$0xff]  ;;  %v643_v42 = vld [vmem:[%s1447_s1 + $0x80] sm:$0xff]  ;;  %v940_v56 = vadd.f32 %v939_v51, %v938_v43 }
 0x6d6   : > { %612 = vmatpush.msrb.mxu3 %v562_v10  ;;  %679 = vmatpush.msra.mxu0 %v644_v44 }
 0x6d7   : > { %v941_v48 = vrot.slane %v940_v56, 1 }
 0x6d8   : > { %613 = vmatpush.msrb.mxu3 %v561_v11  ;;  %680 = vmatpush.msra.mxu0 %v643_v42 }
 0x6d9   : > { %v942_v63 = vadd.f32 %v941_v48, %v940_v56 }
 0x6da   : > { %637 = vmatpush.msra.mxu3 %v554_v6 }
 0x6dc   : > { %638 = vmatpush.msra.mxu3 %v539_v62 }
 0x764   : > { %v579_v14 = vpop.trf.xlu2 }
 0x765   : > { %1110 = vmatmul.msk.f32.vlgmr.msrb.gmra.mxu3 %vm150_vm0, %v579_v14 }
 0x7e8   : > { %v1371_v15 = vpop.f32.mrf.mxu3 }
 0x7e9   : > { %619 = vrot.lane.b32.xlu1 %v1371_v15, %s1204_s17  ;;  %1112 = vmatmul.msk.f32.vlgmr.msra.gmra.mxu0 %vm181_vm1, %v1371_v15 }
 0x85b   : > { %v620_v16 = vpop.permute.xlu1 %619 }
 0x85c   : > { %1111 = vmatmul.msk.f32.vlgmr.msra.gmra.mxu3 %vm150_vm0, %v620_v16 }
 0x866   : > { %v682_v28 = vpop.f32.mrf.mxu0 }
 0x8df   : > { %v1378_v17 = vpop.f32.mrf.mxu3 }
 0x8e0   : > { %v649_v18 = vsel %vm648_vm8, %v1378_v17, 0.0  ;;  %vm864_vm8 = vcmask 9216  }
 0x8e1   : > { %650 = vadd.xlane.f32.xlu0 %v649_v18 }
 0x954   : > { %v651_v19 = vpop.xlane.xlu0 %650 }
 0x955   : > { %v652_v20 = vadd.f32 1.0, %v651_v19 }
 0x957   : > { %1173 = vrsqrt.f32 %v652_v20  ;;  %vm659_vm10 = vweird.f32 %v652_v20 }
 0x958   : > { %1175 = vrcp.f32 %v1205_v33  ;;  %v860_v33 = vld [vmem:[%s1447_s1 + $0xc8] sm:$0xff] }
 0x959   : > { %1177 = vrcp.f32 %v1206_v35  ;;  %v859_v35 = vld [vmem:[%s1447_s1 + $0xc0] sm:$0xff] }
 0x95d   : > { %v1174_v21 = vpop.eup %1173 }
 0x95e   : > { %v654_v22 = vmul.f32 %v1174_v21, %v652_v20  ;;  %vm660_vm9 = vweird.f32 %v1174_v21  ;;  %v1176_v37 = vpop.eup %1175 }
 0x95f   : > { %vm661_vm11 = vmor %vm659_vm10, %vm660_vm9  ;;  %v1178_v38 = vpop.eup %1177  ;;  %v944_v45 = vmul.f32 16.0, %v1176_v37  ;;  %vm948_vm15 = vweird.f32 %v1176_v37  ;;  %vm906_vm10 = vcmask 1041408  }
 0x960   : > { %v655_v23 = vmul.f32 %v1174_v21, %v654_v22  ;;  %v960_v47 = vmul.f32 4.0, %v1178_v38  ;;  %vm964_vm2 = vweird.f32 %v1178_v38 }
 0x961   : > { %v945_v52 = vsub.f32 1.0, %v944_v45 }
 0x962   : > { %v656_v24 = vmul.f32 0.5, %v655_v23  ;;  %v961_v54 = vsub.f32 1.0, %v960_v47 }
 0x963   : > { %v946_v58 = vmul.f32 %v1176_v37, %v945_v52 }
 0x964   : > { %v657_v26 = vsub.f32 1.5, %v656_v24  ;;  %v962_v59 = vmul.f32 %v1178_v38, %v961_v54 }
 0x965   : > { %v947_v25 = vadd.f32 %v1176_v37, %v946_v58 }
 0x966   : > { %v658_v27 = vmul.f32 %v1174_v21, %v657_v26  ;;  %v963_v61 = vadd.f32 %v1178_v38, %v962_v59 }
 0x967   : > { %v949_v1 = vsel %vm948_vm15, %v1176_v37, %v947_v25 }
 0x968   : > { %v662_v29 = vsel %vm661_vm11, %v1174_v21, %v658_v27  ;;  %v965_v2 = vsel %vm964_vm2, %v1178_v38, %v963_v61  ;;  %v950_v4 = vmul.f32 %v949_v1, %v942_v63 }
 0x969   : > { %v685_v30 = vmul.f32 %v682_v28, %v662_v29 }
 0x96b   : > { %1113 = vmatpush.msk.msra.mxu1 %vm689_vm12, %v685_v30 }
 0x96c   : > { %1114 = vmatmul.msk.f32.vlgmr.msra.gmra.mxu1 %vm506_vm13, %v1378_v17 }
 0x96d   : > { %893 = vmatpush.msrb.mxu1 %v862_v32 }
 0x9e9   : > { %v710_v39 = vpop.f32.mrf.mxu1 }
 0x9ea   : > { %v711_v40 = vadd.f32 %v710_v39, %v685_v30  ;;  %v329_v30 = vsel %vm150_vm0, %v1276_v34, -inf }
 0x9ec   : > { %v713_v46 = vmul.f32 %v711_v40, %v662_v29 }
 0x9ee   : > { %v715_v49 = vadd.f32 %v1154_v41, %v713_v46 }
 0x9f0   : > { %v716_v53 = vmax.f32 %v715_v49, 0.0 }
 0x9f2   : > { %v952_v55 = vsel %vm951_vm14, %v716_v53, 0.0  ;;  %1115 = vmatmul.msk.f32.vlgmr.msra.gmra.mxu2 %vm150_vm0, %v716_v53 }
 0x9f3   : > { %v953_v57 = vrot.slane %v952_v55, 4 }
 0x9f5   : > { %v954_v60 = vadd.f32 %v953_v57, %v952_v55 }
 0x9f7   : > { %v955_v50 = vrot.slane %v954_v60, 2 }
 0x9f9   : > { %v956_v62 = vadd.f32 %v955_v50, %v954_v60 }
 0x9fb   : > { %v957_v0 = vrot.slane %v956_v62, 1 }
 0x9fd   : > { %v958_v3 = vadd.f32 %v957_v0, %v956_v62 }
 0x9ff   : > { %v966_v5 = vmul.f32 %v965_v2, %v958_v3 }
 0xa01   : > { %v1396_v6 = vadd.f32 %v966_v5, %v950_v4 }
 0xa75   : > { %v741_v8 = vpop.f32.mrf.mxu2 }
 0xa76   : > { %v742_v9 = vadd.f32 %v1155_v7, %v741_v8 }
 0xa78   : > { %v745_v10 = vsel %vm744_vm3, %v742_v9, -inf }
 0xa79   : > { %746 = vmax.xlane.f32.xlu2 %v745_v10  ;;  %v987_v10 = vld [vmem:[%s1447_s1 + $0xf0] sm:$0xff] }
 0xaec   : > { %v747_v11 = vpop.xlane.xlu2 %746 }
 0xaed   : > { %v748_v12 = vsub.f32 %v742_v9, %v747_v11  ;;  %v986_v11 = vld [vmem:[%s1447_s1 + $0xe8] sm:$0xff] }
 0xaef   : > { %v749_v13 = vmul.f32 1.442695, %v748_v12  ;;  %v1207_v12 = vmov 2.0  }
 0xaf1   : > { %1179 = vpow2.f32 %v749_v13 }
 0xaf7   : > { %v1180_v44 = vpop.eup %1179 }
 0xaf8   : > { %v751_v14 = vsel %vm744_vm3, %v1180_v44, 0.0  ;;  %vm967_vm3 = vcmask 123904  }
 0xaf9   : > { %752 = vadd.xlane.f32.xlu0 %v751_v14 }
 0xb0d   : > { %769 = vrot.lane.b32.xlu0 %v1378_v17, %s1203_s21 }
 0xb6c   : > { %v753_v42 = vpop.xlane.xlu0 %752 }
 0xb6d   : > { %1181 = vrcp.f32 %v753_v42  ;;  %v765_v20 = vand.u32 2147483648, %v753_v42  ;;  %v763_v22 = vand.u32 2147483647, %v753_v42  ;;  %vm759_vm5 = vweird.f32 %v753_v42 }
 0xb6f   : > { %v766_v24 = vor.u32 1.1754944e-38, %v765_v20  ;;  %vm764_vm7 = vcmp.eq.f32.partialorder %v763_v22, 8.507059e+37 }
 0xb73   : > { %v1182_v16 = vpop.eup %1181 }
 0xb74   : > { %v755_v18 = vmul.f32 %v1182_v16, %v753_v42  ;;  %vm760_vm4 = vweird.f32 %v1182_v16  ;;  %v1156_v42 = vld [vmem:[%s1447_s1 + $0xe0] ss:$0 sm:$0xff] }
 0xb75   : > { %vm761_vm6 = vmor %vm759_vm5, %vm760_vm4  ;;  %vm1019_vm5 = vcmask 7168  }
 0xb76   : > { %v756_v19 = vsub.f32 1.0, %v755_v18 }
 0xb78   : > { %v757_v21 = vmul.f32 %v1182_v16, %v756_v19 }
 0xb7a   : > { %v758_v23 = vadd.f32 %v1182_v16, %v757_v21 }
 0xb7c   : > { %v762_v26 = vsel %vm761_vm6, %v1182_v16, %v758_v23  ;;  %vm1021_vm6 = vcmask 39936  }
 0xb7d   : > { %v767_v27 = vsel %vm764_vm7, %v766_v24, %v762_v26  ;;  %vm1026_vm7 = vcmask 171008  }
 0xb7e   : > { %v768_v28 = vmul.f32 %v1180_v44, %v767_v27 }
 0xb7f   : > { %v770_v29 = vpop.permute.xlu0 %769 }
 0xb80   : > { %v772_v17 = vsel %vm181_vm1, %v1371_v15, %v770_v29  ;;  %773 = vxpose.xlu0.b32.start.end [1/1] (short) (narrow) %v768_v28, 8  ;;  %1118 = vmatpush.msk.msrb.mxu0 %vm689_vm12, %v768_v28  ;;  %v861_v15 = vld [vmem:[%s1447_s1 + $0xd0] sm:$0xff] }
 0xb81   : > { %1116 = vmatpush.msk.msrb.mxu3 %vm689_vm12, %v772_v17  ;;  %894 = vmatpush.msrb.mxu1 %v861_v15  ;;  %vm902_vm12 = vcmask 15360  }
 0xb83   : > { %895 = vmatpush.msrb.mxu1 %v860_v33  ;;  %1006 = vmatpush.msra.mxu3 %v987_v10 }
 0xb85   : > { %896 = vmatpush.msrb.mxu1 %v859_v35  ;;  %1007 = vmatpush.msra.mxu3 %v986_v11  ;;  %v988_v35 = vld [vmem:[%s1447_s1 + $0xf8] sm:$0x1] }
 0xbf1   : > { %330 = vmax.xlane.f32.xlu0 %v329_v30 }
 0xc24   : > { %v789_v31 = vpop.trf.xlu0 }
 0xc25   : > { %1117 = vmatmul.msk.f32.vlgmr.msrb.gmra.mxu3 %vm506_vm13, %v789_v31 }
 0xc64   : > { %v331_v38 = vpop.xlane.xlu0 %330 }
 0xc65   : > { %v332_v39 = vsub.f32 %v1276_v34, %v331_v38 }
 0xc67   : > { %v333_v40 = vmul.f32 1.442695, %v332_v39 }
 0xc69   : > { %1183 = vpow2.f32 %v333_v40  ;;  %v1210_v40 = vmov 8.0  }
 0xc6f   : > { %v1184_v45 = vpop.eup %1183 }
 0xc70   : > { %v335_v46 = vsel %vm150_vm0, %v1184_v45, 0.0 }
 0xca8   : > { %v828_v36 = vpop.f32.mrf.mxu3 }
 0xca9   : > { %832 = vrot.lane.b32.xlu1 %v828_v36, %s1204_s17  ;;  %1120 = vmatmul.msk.f32.vlgmr.msrb.gmra.mxu1 %vm181_vm1, %v828_v36 }
 0xd1b   : > { %v833_v37 = vpop.permute.xlu1 %832 }
 0xd1c   : > { %1119 = vmatmul.msk.f32.vlgmr.msrb.gmra.mxu0 %vm506_vm13, %v833_v37 }
 0xd26   : > { %v898_v48 = vpop.f32.mrf.mxu1 }
 0xd99   : > { %v856_v41 = vpop.f32.mrf.mxu0 }
 0xd9a   : > { %v865_v43 = vsel %vm864_vm8, %v856_v41, 0.0  ;;  %vm1028_vm8 = vcmask 1040384  }
 0xd9b   : > { %866 = vadd.xlane.f32.xlu1 %v865_v43 }
 0xda3   : > { %336 = vadd.xlane.f32.xlu1 %v335_v46 }
 0xe0e   : > { %v867_v47 = vpop.xlane.xlu1 %866 }
 0xe0f   : > { %v868_v49 = vadd.f32 1.0, %v867_v47 }
 0xe11   : > { %1185 = vrsqrt.f32 %v868_v49  ;;  %vm875_vm13 = vweird.f32 %v868_v49 }
 0xe16   : > { %v337_v51 = vpop.xlane.xlu1 %336 }
 0xe17   : > { %v1186_v52 = vpop.eup %1185  ;;  %1187 = vrcp.f32 %v337_v51  ;;  %v349_v60 = vand.u32 2147483648, %v337_v51  ;;  %v347_v61 = vand.u32 2147483647, %v337_v51  ;;  %vm343_vm14 = vweird.f32 %v337_v51 }
 0xe18   : > { %v870_v53 = vmul.f32 %v1186_v52, %v868_v49  ;;  %vm876_vm1 = vweird.f32 %v1186_v52 }
 0xe19   : > { %vm877_vm9 = vmor %vm875_vm13, %vm876_vm1  ;;  %v350_v0 = vor.u32 1.1754944e-38, %v349_v60  ;;  %vm348_vm2 = vcmp.eq.f32.partialorder %v347_v61, 8.507059e+37 }
 0xe1a   : > { %v871_v54 = vmul.f32 %v1186_v52, %v870_v53 }
 0xe1c   : > { %v872_v55 = vmul.f32 0.5, %v871_v54 }
 0xe1d   : > { %v1188_v34 = vpop.eup %1187 }
 0xe1e   : > { %v873_v56 = vsub.f32 1.5, %v872_v55  ;;  %v339_v57 = vmul.f32 %v1188_v34, %v337_v51  ;;  %vm344_vm11 = vweird.f32 %v1188_v34 }
 0xe1f   : > { %vm345_vm15 = vmor %vm343_vm14, %vm344_vm11 }
 0xe20   : > { %v874_v58 = vmul.f32 %v1186_v52, %v873_v56  ;;  %v340_v59 = vsub.f32 1.0, %v339_v57 }
 0xe22   : > { %v878_v50 = vsel %vm877_vm9, %v1186_v52, %v874_v58  ;;  %v341_v25 = vmul.f32 %v1188_v34, %v340_v59 }
 0xe23   : > { %v901_v62 = vmul.f32 %v898_v48, %v878_v50 }
 0xe24   : > { %v342_v63 = vadd.f32 %v1188_v34, %v341_v25 }
 0xe25   : > { %1121 = vmatpush.msk.msrb.mxu2 %vm906_vm10, %v901_v62 }
 0xe26   : > { %1122 = vmatmul.msk.f32.vlgmr.msrb.gmra.mxu2 %vm902_vm12, %v856_v41  ;;  %v346_v1 = vsel %vm345_vm15, %v1188_v34, %v342_v63 }
 0xe27   : > { %v351_v2 = vsel %vm348_vm2, %v350_v0, %v346_v1 }
 0xe28   : > { %v352_v3 = vmul.f32 %v1184_v45, %v351_v2 }
 0xe2a   : > { %v353_v4 = vadd.f32 1e-10, %v352_v3 }
 0xe2c   : > { %1189 = vlog2.f32 %v353_v4 }
 0xe2d   : > { %1191 = vrcp.f32 %v1207_v12 }
 0xe2e   : > { %1193 = vrcp.f32 %v1210_v40 }
 0xe32   : > { %v1190_v5 = vpop.eup %1189 }
 0xe33   : > { %v355_v7 = vmul.f32 0.6931472, %v1190_v5  ;;  %v1192_v13 = vpop.eup %1191 }
 0xe34   : > { %v976_v18 = vmul.f32 2.0, %v1192_v13  ;;  %vm980_vm4 = vweird.f32 %v1192_v13  ;;  %v1194_v43 = vpop.eup %1193 }
 0xe35   : > { %v356_v8 = vmul.f32 %v355_v7, %v352_v3  ;;  %v368_v45 = vmul.f32 8.0, %v1194_v43 }
 0xe36   : > { %v977_v21 = vsub.f32 1.0, %v976_v18 }
 0xe37   : > { %v357_v9 = vsel %vm150_vm0, %v356_v8, 0.0  ;;  %v369_v47 = vsub.f32 1.0, %v368_v45 }
 0xe38   : > { %358 = vadd.xlane.f32.xlu1 %v357_v9  ;;  %v978_v24 = vmul.f32 %v1192_v13, %v977_v21 }
 0xe39   : > { %v370_v51 = vmul.f32 %v1194_v43, %v369_v47 }
 0xe3a   : > { %v979_v28 = vadd.f32 %v1192_v13, %v978_v24 }
 0xe3b   : > { %v371_v53 = vadd.f32 %v1194_v43, %v370_v51 }
 0xe3c   : > { %v981_v30 = vsel %vm980_vm4, %v1192_v13, %v979_v28 }
 0xea9   : > { %v927_v44 = vpop.f32.mrf.mxu2 }
 0xeaa   : > { %v928_v14 = vadd.f32 %v927_v44, %v901_v62 }
 0xeab   : > { %v359_v38 = vpop.xlane.xlu1 %358 }
 0xeac   : > { %v930_v16 = vmul.f32 %v928_v14, %v878_v50  ;;  %v360_v39 = vsub.f32 0.0, %v359_v38 }
 0xeae   : > { %v932_v19 = vadd.f32 %v1156_v42, %v930_v16  ;;  %v361_v41 = vrot.slane %v360_v39, 4 }
 0xeb0   : > { %v933_v20 = vmax.f32 %v932_v19, 0.0 }
 0xeb2   : > { %v968_v22 = vsel %vm967_vm3, %v933_v20, 0.0 }
 0xeb3   : > { %v969_v23 = vrot.slane %v968_v22, 4 }
 0xeb5   : > { %v970_v26 = vadd.f32 %v969_v23, %v968_v22 }
 0xeb7   : > { %v971_v27 = vrot.slane %v970_v26, 2 }
 0xeb9   : > { %v972_v29 = vadd.f32 %v971_v27, %v970_v26 }
 0xebb   : > { %v973_v17 = vrot.slane %v972_v29, 1 }
 0xebd   : > { %v974_v31 = vadd.f32 %v973_v17, %v972_v29 }
 0xebf   : > { %v982_v32 = vmul.f32 %v981_v30, %v974_v31 }
 0xec1   : > { %v984_v15 = vadd.f32 %v1396_v6, %v982_v32  ;;  %v362_v6 = vadd.f32 %v361_v41, %v360_v39 }
 0xec3   : > { %v985_v33 = vmul.f32 0.33333334, %v984_v15  ;;  %v363_v46 = vrot.slane %v362_v6, 2 }
 0xec5   : > { %1123 = vmatmul.msk.f32.vlgmr.msra.gmra.mxu3 %vm150_vm0, %v985_v33  ;;  %1016 = vrot.lane.b32.xlu1 %v985_v33, %s1208_s3  ;;  %v364_v49 = vadd.f32 %v363_v46, %v362_v6  ;;  %vm372_vm0 = vweird.f32 %v1194_v43 }
 0xec6   : > { %v373_v55 = vsel %vm372_vm0, %v1194_v43, %v371_v53 }
 0xec7   : > { %v365_v52 = vrot.slane %v364_v49, 1 }
 0xec9   : > { %v366_v54 = vadd.f32 %v365_v52, %v364_v49 }
 0xecb   : > { %v374_v34 = vmul.f32 %v373_v55, %v366_v54 }
 0xf37   : > { %v1017_v57 = vpop.permute.xlu1 %1016 }
 0xf48   : > { %v1009_v36 = vpop.f32.mrf.mxu3 }
 0xf49   : > { %v1010_v37 = vadd.f32 %v1009_v36, %v988_v35 }
 0xf4b   : > { %1013 = vrot.lane.b32.xlu2 %v1010_v37, %s1209_s6 }
 0xfa5   : > { %v1014_v56 = vpop.permute.xlu2 %1013 }
 0xfa6   : > { %v1020_v58 = vsel %vm1019_vm5, %v374_v34, %v1014_v56 }
 0xfa7   : > { %v1022_v59 = vsel %vm1021_vm6, %v1020_v58, %v1017_v57 }
 0xfa8   : > { %v1027_v60 = vsel %vm1026_vm7, %v1022_v59, 0.0 }
 0xfa9   : > { %v1029_v48 = vsel %vm1028_vm8, %v1027_v60, 0.0 }
 0xfaa   : > { %1033 = vst [vmem:[%s1274_s7 + $0x18] sm:$0xff] %v1029_v48 }
 0xfab PF: > { %s12_s9 = sadd.s32 1, %s1201_s9  }
 0xfac   : > { %p9_p4 = scmp.ge.s32.totalorder %s12_s9, 4  }
 0xfae   :  { %11 = sbr.rel (!%p9_p4) target bundleno = 1 (0x1), region = 58 }

</bundles_post_ra>
